<compile_context>
chip_gen: v7x
topology: tpu7x:2x2x1
jax: 0.10.0
libtpu: 0.0.40
codegen_flags: <defaults>
</compile_context>

<pallas_src>
import jax
import jax.numpy as jnp
from jax import lax
from jax.experimental import pallas as pl
from jax.experimental.pallas import tpu as pltpu


def _fused_rnn_kernel(ids_ref,      # SMEM (B*T,) int32, scalar-prefetched, time-major
                      emb_ref,      # VMEM (V, E)  f32
                      wih_t_ref,    # VMEM (E, H)  f32   (W_ih^T)
                      bias_ref,     # VMEM (1, H)  f32   (b_ih + b_hh)
                      whh_t_ref,    # VMEM (H, H)  f32   (W_hh^T)
                      wfc_t_ref,    # VMEM (H, 2)  f32   (W_fc^T)
                      bfc_ref,      # VMEM (1, 2)  f32
                      out_ref,      # VMEM (B, 2)  f32   (logits)
                      xemb_ref):    # VMEM scratch (B*T, E) f32
    BT, _ = xemb_ref.shape
    B = out_ref.shape[0]
    T = BT // B
    H = whh_t_ref.shape[0]

    # 1) Embedding gather: B*T scalar-indexed dynamic row reads (ids in SMEM).
    for i in range(BT):
        xemb_ref[pl.ds(i, 1), :] = emb_ref[pl.ds(ids_ref[i], 1), :]

    # 2) Time-parallel input projection: one MXU matmul for all steps.
    #    Rows are time-major (row = t*B + b), so no transpose is needed.
    x_proj = (jnp.dot(xemb_ref[...], wih_t_ref[...],
                      preferred_element_type=jnp.float32)
              + bias_ref[...])                                   # (B*T, H)

    # 3) Serial tanh recurrence + running time sum (fully unrolled, T=8).
    whh_t = whh_t_ref[...]                                       # hoisted: read once
    h = jnp.zeros((B, H), jnp.float32)
    acc = jnp.zeros((B, H), jnp.float32)
    for t in range(T):                                           # static unroll
        xp_t = x_proj[t * B:(t + 1) * B, :]                      # static (B, H) slice
        h = jnp.tanh(xp_t + jnp.dot(h, whh_t,
                                    preferred_element_type=jnp.float32))
        acc = acc + h

    mean_h = acc * (1.0 / T)                                     # avg_pool2d over (T,1)

    # 4) Fused final Linear(H, 2).
    out_ref[...] = (jnp.dot(mean_h, wfc_t_ref[...],
                            preferred_element_type=jnp.float32)
                    + bfc_ref[...])


@jax.jit
def rnn_forward(token_ids, emb_table, w_ih, w_hh, b_ih, b_hh, w_fc, b_fc):
    """token_ids: (B, T) int32. Returns logits (B, 2) float32."""
    B, T = token_ids.shape
    H, E = w_ih.shape

    # Layout plumbing only (tiny weight transposes; no activation round trips).
    ids_flat = jnp.transpose(token_ids).reshape(B * T).astype(jnp.int32)  # time-major
    wih_t = jnp.transpose(w_ih).astype(jnp.float32)                       # (E, H)
    whh_t = jnp.transpose(w_hh).astype(jnp.float32)                       # (H, H)
    bias = (b_ih + b_hh).astype(jnp.float32).reshape(1, H)                # (1, H)
    wfc_t = jnp.transpose(w_fc).astype(jnp.float32)                       # (H, 2)
    bfc = b_fc.astype(jnp.float32).reshape(1, 2)                          # (1, 2)

    grid_spec = pltpu.PrefetchScalarGridSpec(
        num_scalar_prefetch=1,                 # ids -> SMEM before the grid runs
        grid=(1,),                             # single invocation (serial chain)
        in_specs=[
            pl.BlockSpec(memory_space=pltpu.MemorySpace.VMEM),  # emb_table
            pl.BlockSpec(memory_space=pltpu.MemorySpace.VMEM),  # W_ih^T
            pl.BlockSpec(memory_space=pltpu.MemorySpace.VMEM),  # fused bias
            pl.BlockSpec(memory_space=pltpu.MemorySpace.VMEM),  # W_hh^T
            pl.BlockSpec(memory_space=pltpu.MemorySpace.VMEM),  # W_fc^T
            pl.BlockSpec(memory_space=pltpu.MemorySpace.VMEM),  # b_fc
        ],
        out_specs=pl.BlockSpec(memory_space=pltpu.MemorySpace.VMEM),
        scratch_shapes=[pltpu.VMEM((B * T, E), jnp.float32)],   # gathered embeddings
    )

    logits = pl.pallas_call(
        _fused_rnn_kernel,
        out_shape=jax.ShapeDtypeStruct((B, 2), jnp.float32),
        grid_spec=grid_spec,
        compiler_params=pltpu.CompilerParams(
            dimension_semantics=("arbitrary",)),
    )(ids_flat, emb_table.astype(jnp.float32), wih_t, bias, whh_t, wfc_t, bfc)
    return logits


def _reference_forward(token_ids, emb_table, w_ih, w_hh, b_ih, b_hh, w_fc, b_fc):
    """Pure-JAX reference matching PyTorch semantics (high-precision matmuls)."""
    hp = lax.Precision.HIGHEST
    x = jnp.take(emb_table, token_ids, axis=0)                    # (B, T, E)
    B, T, _ = x.shape
    H = w_ih.shape[0]
    h = jnp.zeros((B, H), jnp.float32)
    hs = []
    for t in range(T):
        h = jnp.tanh(jnp.dot(x[:, t, :], w_ih.T, precision=hp) + b_ih
                     + jnp.dot(h, w_hh.T, precision=hp) + b_hh)
        hs.append(h)
    hs = jnp.stack(hs, axis=1)                                    # (B, T, H)
    pooled = jnp.mean(hs, axis=1)                                 # (B, H)
    return jnp.dot(pooled, w_fc.T, precision=hp) + b_fc           # (B, 2)


if __name__ == "__main__":
    # Small shapes consistent with the module.
    max_words, emb_size, hid_size, dropout = 100, 32, 32, 0.2  # dropout unused in forward
    B, T = 2, 8

    key = jax.random.PRNGKey(0)
    ks = jax.random.split(key, 8)

    bound_rnn = 1.0 / jnp.sqrt(hid_size)
    emb_table = jax.random.normal(ks[0], (max_words, emb_size), jnp.float32)
    w_ih = jax.random.uniform(ks[1], (hid_size, emb_size), jnp.float32, -bound_rnn, bound_rnn)
    w_hh = jax.random.uniform(ks[2], (hid_size, hid_size), jnp.float32, -bound_rnn, bound_rnn)
    b_ih = jax.random.uniform(ks[3], (hid_size,), jnp.float32, -bound_rnn, bound_rnn)
    b_hh = jax.random.uniform(ks[4], (hid_size,), jnp.float32, -bound_rnn, bound_rnn)
    w_fc = jax.random.uniform(ks[5], (2, hid_size), jnp.float32, -bound_rnn, bound_rnn)
    b_fc = jax.random.uniform(ks[6], (2,), jnp.float32, -bound_rnn, bound_rnn)

    token_ids = jax.random.randint(ks[7], (B, T), 0, max_words, jnp.int32)

    out = rnn_forward(token_ids, emb_table, w_ih, w_hh, b_ih, b_hh, w_fc, b_fc)
    out = jax.block_until_ready(out)

    ref = _reference_forward(token_ids, emb_table, w_ih, w_hh, b_ih, b_hh, w_fc, b_fc)
    assert out.shape == (B, 2), out.shape
    # Tolerance accommodates TPU MXU f32 pass-count differences between the
    # in-kernel Mosaic matmuls and the HIGHEST-precision XLA reference.
    assert jnp.allclose(out, ref, atol=1e-2, rtol=1e-2), (out, ref)

    print("KERNEL_OK")
</pallas_src>

<mosaic_0001>
module attributes {stable_mosaic.version = 11 : i64} {
  func.func @_fused_rnn_kernel(%arg0: i32, %arg1: memref<16xi32, #tpu.memory_space<smem>>, %arg2: memref<100x32xf32, #tpu.memory_space<vmem>>, %arg3: memref<32x32xf32, #tpu.memory_space<vmem>>, %arg4: memref<1x32xf32, #tpu.memory_space<vmem>>, %arg5: memref<32x32xf32, #tpu.memory_space<vmem>>, %arg6: memref<32x2xf32, #tpu.memory_space<vmem>>, %arg7: memref<1x2xf32, #tpu.memory_space<vmem>>, %arg8: memref<2x2xf32, #tpu.memory_space<vmem>>, %arg9: memref<16x32xf32, #tpu.memory_space<vmem>>) attributes {dimension_semantics = [#tpu.dimension_semantics<arbitrary>], iteration_bounds = array<i64: 1>, scalar_prefetch = 1 : i64, scratch_operands = 1 : i64, tpu.core_type = #tpu.core_type<tc>, window_params = [{pipeline_mode = #tpu.pipeline_mode<synchronous>, transform_indices = @transform_0, window_bounds = array<i64: 100, 32>}, {pipeline_mode = #tpu.pipeline_mode<synchronous>, transform_indices = @transform_1, window_bounds = array<i64: 32, 32>}, {pipeline_mode = #tpu.pipeline_mode<synchronous>, transform_indices = @transform_2, window_bounds = array<i64: 1, 32>}, {pipeline_mode = #tpu.pipeline_mode<synchronous>, transform_indices = @transform_3, window_bounds = array<i64: 32, 32>}, {pipeline_mode = #tpu.pipeline_mode<synchronous>, transform_indices = @transform_4, window_bounds = array<i64: 32, 2>}, {pipeline_mode = #tpu.pipeline_mode<synchronous>, transform_indices = @transform_5, window_bounds = array<i64: 1, 2>}, {pipeline_mode = #tpu.pipeline_mode<synchronous>, transform_indices = @transform_6, window_bounds = array<i64: 2, 2>}]} {
    %c0 = arith.constant 0 : index
    %0 = memref.load %arg1[%c0] : memref<16xi32, #tpu.memory_space<smem>>
    %1 = arith.index_cast %0 : i32 to index
    %c0_0 = arith.constant 0 : index
    %2 = vector.load %arg2[%1, %c0_0] : memref<100x32xf32, #tpu.memory_space<vmem>>, vector<1x32xf32>
    %c0_1 = arith.constant 0 : index
    %c0_2 = arith.constant 0 : index
    %3 = vector.load %arg9[%c0_1, %c0_2] : memref<16x32xf32, #tpu.memory_space<vmem>>, vector<1x32xf32>
    tpu.vector_store %arg9[%c0_1, %c0_2], %2 {strides = array<i32>} : memref<16x32xf32, #tpu.memory_space<vmem>>, vector<1x32xf32>,
    %c1 = arith.constant 1 : index
    %4 = memref.load %arg1[%c1] : memref<16xi32, #tpu.memory_space<smem>>
    %5 = arith.index_cast %4 : i32 to index
    %c0_3 = arith.constant 0 : index
    %6 = vector.load %arg2[%5, %c0_3] : memref<100x32xf32, #tpu.memory_space<vmem>>, vector<1x32xf32>
    %c1_4 = arith.constant 1 : index
    %c0_5 = arith.constant 0 : index
    %7 = vector.load %arg9[%c1_4, %c0_5] : memref<16x32xf32, #tpu.memory_space<vmem>>, vector<1x32xf32>
    tpu.vector_store %arg9[%c1_4, %c0_5], %6 {strides = array<i32>} : memref<16x32xf32, #tpu.memory_space<vmem>>, vector<1x32xf32>,
    %c2 = arith.constant 2 : index
    %8 = memref.load %arg1[%c2] : memref<16xi32, #tpu.memory_space<smem>>
    %9 = arith.index_cast %8 : i32 to index
    %c0_6 = arith.constant 0 : index
    %10 = vector.load %arg2[%9, %c0_6] : memref<100x32xf32, #tpu.memory_space<vmem>>, vector<1x32xf32>
    %c2_7 = arith.constant 2 : index
    %c0_8 = arith.constant 0 : index
    %11 = vector.load %arg9[%c2_7, %c0_8] : memref<16x32xf32, #tpu.memory_space<vmem>>, vector<1x32xf32>
    tpu.vector_store %arg9[%c2_7, %c0_8], %10 {strides = array<i32>} : memref<16x32xf32, #tpu.memory_space<vmem>>, vector<1x32xf32>,
    %c3 = arith.constant 3 : index
    %12 = memref.load %arg1[%c3] : memref<16xi32, #tpu.memory_space<smem>>
    %13 = arith.index_cast %12 : i32 to index
    %c0_9 = arith.constant 0 : index
    %14 = vector.load %arg2[%13, %c0_9] : memref<100x32xf32, #tpu.memory_space<vmem>>, vector<1x32xf32>
    %c3_10 = arith.constant 3 : index
    %c0_11 = arith.constant 0 : index
    %15 = vector.load %arg9[%c3_10, %c0_11] : memref<16x32xf32, #tpu.memory_space<vmem>>, vector<1x32xf32>
    tpu.vector_store %arg9[%c3_10, %c0_11], %14 {strides = array<i32>} : memref<16x32xf32, #tpu.memory_space<vmem>>, vector<1x32xf32>,
    %c4 = arith.constant 4 : index
    %16 = memref.load %arg1[%c4] : memref<16xi32, #tpu.memory_space<smem>>
    %17 = arith.index_cast %16 : i32 to index
    %c0_12 = arith.constant 0 : index
    %18 = vector.load %arg2[%17, %c0_12] : memref<100x32xf32, #tpu.memory_space<vmem>>, vector<1x32xf32>
    %c4_13 = arith.constant 4 : index
    %c0_14 = arith.constant 0 : index
    %19 = vector.load %arg9[%c4_13, %c0_14] : memref<16x32xf32, #tpu.memory_space<vmem>>, vector<1x32xf32>
    tpu.vector_store %arg9[%c4_13, %c0_14], %18 {strides = array<i32>} : memref<16x32xf32, #tpu.memory_space<vmem>>, vector<1x32xf32>,
    %c5 = arith.constant 5 : index
    %20 = memref.load %arg1[%c5] : memref<16xi32, #tpu.memory_space<smem>>
    %21 = arith.index_cast %20 : i32 to index
    %c0_15 = arith.constant 0 : index
    %22 = vector.load %arg2[%21, %c0_15] : memref<100x32xf32, #tpu.memory_space<vmem>>, vector<1x32xf32>
    %c5_16 = arith.constant 5 : index
    %c0_17 = arith.constant 0 : index
    %23 = vector.load %arg9[%c5_16, %c0_17] : memref<16x32xf32, #tpu.memory_space<vmem>>, vector<1x32xf32>
    tpu.vector_store %arg9[%c5_16, %c0_17], %22 {strides = array<i32>} : memref<16x32xf32, #tpu.memory_space<vmem>>, vector<1x32xf32>,
    %c6 = arith.constant 6 : index
    %24 = memref.load %arg1[%c6] : memref<16xi32, #tpu.memory_space<smem>>
    %25 = arith.index_cast %24 : i32 to index
    %c0_18 = arith.constant 0 : index
    %26 = vector.load %arg2[%25, %c0_18] : memref<100x32xf32, #tpu.memory_space<vmem>>, vector<1x32xf32>
    %c6_19 = arith.constant 6 : index
    %c0_20 = arith.constant 0 : index
    %27 = vector.load %arg9[%c6_19, %c0_20] : memref<16x32xf32, #tpu.memory_space<vmem>>, vector<1x32xf32>
    tpu.vector_store %arg9[%c6_19, %c0_20], %26 {strides = array<i32>} : memref<16x32xf32, #tpu.memory_space<vmem>>, vector<1x32xf32>,
    %c7 = arith.constant 7 : index
    %28 = memref.load %arg1[%c7] : memref<16xi32, #tpu.memory_space<smem>>
    %29 = arith.index_cast %28 : i32 to index
    %c0_21 = arith.constant 0 : index
    %30 = vector.load %arg2[%29, %c0_21] : memref<100x32xf32, #tpu.memory_space<vmem>>, vector<1x32xf32>
    %c7_22 = arith.constant 7 : index
    %c0_23 = arith.constant 0 : index
    %31 = vector.load %arg9[%c7_22, %c0_23] : memref<16x32xf32, #tpu.memory_space<vmem>>, vector<1x32xf32>
    tpu.vector_store %arg9[%c7_22, %c0_23], %30 {strides = array<i32>} : memref<16x32xf32, #tpu.memory_space<vmem>>, vector<1x32xf32>,
    %c8 = arith.constant 8 : index
    %32 = memref.load %arg1[%c8] : memref<16xi32, #tpu.memory_space<smem>>
    %33 = arith.index_cast %32 : i32 to index
    %c0_24 = arith.constant 0 : index
    %34 = vector.load %arg2[%33, %c0_24] : memref<100x32xf32, #tpu.memory_space<vmem>>, vector<1x32xf32>
    %c8_25 = arith.constant 8 : index
    %c0_26 = arith.constant 0 : index
    %35 = vector.load %arg9[%c8_25, %c0_26] : memref<16x32xf32, #tpu.memory_space<vmem>>, vector<1x32xf32>
    tpu.vector_store %arg9[%c8_25, %c0_26], %34 {strides = array<i32>} : memref<16x32xf32, #tpu.memory_space<vmem>>, vector<1x32xf32>,
    %c9 = arith.constant 9 : index
    %36 = memref.load %arg1[%c9] : memref<16xi32, #tpu.memory_space<smem>>
    %37 = arith.index_cast %36 : i32 to index
    %c0_27 = arith.constant 0 : index
    %38 = vector.load %arg2[%37, %c0_27] : memref<100x32xf32, #tpu.memory_space<vmem>>, vector<1x32xf32>
    %c9_28 = arith.constant 9 : index
    %c0_29 = arith.constant 0 : index
    %39 = vector.load %arg9[%c9_28, %c0_29] : memref<16x32xf32, #tpu.memory_space<vmem>>, vector<1x32xf32>
    tpu.vector_store %arg9[%c9_28, %c0_29], %38 {strides = array<i32>} : memref<16x32xf32, #tpu.memory_space<vmem>>, vector<1x32xf32>,
    %c10 = arith.constant 10 : index
    %40 = memref.load %arg1[%c10] : memref<16xi32, #tpu.memory_space<smem>>
    %41 = arith.index_cast %40 : i32 to index
    %c0_30 = arith.constant 0 : index
    %42 = vector.load %arg2[%41, %c0_30] : memref<100x32xf32, #tpu.memory_space<vmem>>, vector<1x32xf32>
    %c10_31 = arith.constant 10 : index
    %c0_32 = arith.constant 0 : index
    %43 = vector.load %arg9[%c10_31, %c0_32] : memref<16x32xf32, #tpu.memory_space<vmem>>, vector<1x32xf32>
    tpu.vector_store %arg9[%c10_31, %c0_32], %42 {strides = array<i32>} : memref<16x32xf32, #tpu.memory_space<vmem>>, vector<1x32xf32>,
    %c11 = arith.constant 11 : index
    %44 = memref.load %arg1[%c11] : memref<16xi32, #tpu.memory_space<smem>>
    %45 = arith.index_cast %44 : i32 to index
    %c0_33 = arith.constant 0 : index
    %46 = vector.load %arg2[%45, %c0_33] : memref<100x32xf32, #tpu.memory_space<vmem>>, vector<1x32xf32>
    %c11_34 = arith.constant 11 : index
    %c0_35 = arith.constant 0 : index
    %47 = vector.load %arg9[%c11_34, %c0_35] : memref<16x32xf32, #tpu.memory_space<vmem>>, vector<1x32xf32>
    tpu.vector_store %arg9[%c11_34, %c0_35], %46 {strides = array<i32>} : memref<16x32xf32, #tpu.memory_space<vmem>>, vector<1x32xf32>,
    %c12 = arith.constant 12 : index
    %48 = memref.load %arg1[%c12] : memref<16xi32, #tpu.memory_space<smem>>
    %49 = arith.index_cast %48 : i32 to index
    %c0_36 = arith.constant 0 : index
    %50 = vector.load %arg2[%49, %c0_36] : memref<100x32xf32, #tpu.memory_space<vmem>>, vector<1x32xf32>
    %c12_37 = arith.constant 12 : index
    %c0_38 = arith.constant 0 : index
    %51 = vector.load %arg9[%c12_37, %c0_38] : memref<16x32xf32, #tpu.memory_space<vmem>>, vector<1x32xf32>
    tpu.vector_store %arg9[%c12_37, %c0_38], %50 {strides = array<i32>} : memref<16x32xf32, #tpu.memory_space<vmem>>, vector<1x32xf32>,
    %c13 = arith.constant 13 : index
    %52 = memref.load %arg1[%c13] : memref<16xi32, #tpu.memory_space<smem>>
    %53 = arith.index_cast %52 : i32 to index
    %c0_39 = arith.constant 0 : index
    %54 = vector.load %arg2[%53, %c0_39] : memref<100x32xf32, #tpu.memory_space<vmem>>, vector<1x32xf32>
    %c13_40 = arith.constant 13 : index
    %c0_41 = arith.constant 0 : index
    %55 = vector.load %arg9[%c13_40, %c0_41] : memref<16x32xf32, #tpu.memory_space<vmem>>, vector<1x32xf32>
    tpu.vector_store %arg9[%c13_40, %c0_41], %54 {strides = array<i32>} : memref<16x32xf32, #tpu.memory_space<vmem>>, vector<1x32xf32>,
    %c14 = arith.constant 14 : index
    %56 = memref.load %arg1[%c14] : memref<16xi32, #tpu.memory_space<smem>>
    %57 = arith.index_cast %56 : i32 to index
    %c0_42 = arith.constant 0 : index
    %58 = vector.load %arg2[%57, %c0_42] : memref<100x32xf32, #tpu.memory_space<vmem>>, vector<1x32xf32>
    %c14_43 = arith.constant 14 : index
    %c0_44 = arith.constant 0 : index
    %59 = vector.load %arg9[%c14_43, %c0_44] : memref<16x32xf32, #tpu.memory_space<vmem>>, vector<1x32xf32>
    tpu.vector_store %arg9[%c14_43, %c0_44], %58 {strides = array<i32>} : memref<16x32xf32, #tpu.memory_space<vmem>>, vector<1x32xf32>,
    %c15 = arith.constant 15 : index
    %60 = memref.load %arg1[%c15] : memref<16xi32, #tpu.memory_space<smem>>
    %61 = arith.index_cast %60 : i32 to index
    %c0_45 = arith.constant 0 : index
    %62 = vector.load %arg2[%61, %c0_45] : memref<100x32xf32, #tpu.memory_space<vmem>>, vector<1x32xf32>
    %c15_46 = arith.constant 15 : index
    %c0_47 = arith.constant 0 : index
    %63 = vector.load %arg9[%c15_46, %c0_47] : memref<16x32xf32, #tpu.memory_space<vmem>>, vector<1x32xf32>
    tpu.vector_store %arg9[%c15_46, %c0_47], %62 {strides = array<i32>} : memref<16x32xf32, #tpu.memory_space<vmem>>, vector<1x32xf32>,
    %c0_48 = arith.constant 0 : index
    %c0_49 = arith.constant 0 : index
    %64 = vector.load %arg9[%c0_48, %c0_49] : memref<16x32xf32, #tpu.memory_space<vmem>>, vector<16x32xf32>
    %c0_50 = arith.constant 0 : index
    %c0_51 = arith.constant 0 : index
    %65 = vector.load %arg3[%c0_50, %c0_51] : memref<32x32xf32, #tpu.memory_space<vmem>>, vector<32x32xf32>
    %cst = arith.constant dense<0.000000e+00> : vector<16x32xf32>
    %66 = tpu.matmul %64, %65, %cst {dimension_numbers = #tpu.dot_dimension_numbers<[1], [0], [0], [1], [0, 0, 1, 1], [], []>} : vector<16x32xf32>, vector<32x32xf32>, vector<16x32xf32> -> vector<16x32xf32>
    %c0_52 = arith.constant 0 : index
    %c0_53 = arith.constant 0 : index
    %67 = vector.load %arg4[%c0_52, %c0_53] : memref<1x32xf32, #tpu.memory_space<vmem>>, vector<1x32xf32>
    %68 = vector.broadcast %67 : vector<1x32xf32> to vector<16x32xf32>
    %69 = arith.addf %66, %68 : vector<16x32xf32>
    %c0_54 = arith.constant 0 : index
    %c0_55 = arith.constant 0 : index
    %70 = vector.load %arg5[%c0_54, %c0_55] : memref<32x32xf32, #tpu.memory_space<vmem>>, vector<32x32xf32>
    %cst_56 = arith.constant 0.000000e+00 : f32
    %71 = vector.broadcast %cst_56 : f32 to vector<2x32xf32>
    %cst_57 = arith.constant 0.000000e+00 : f32
    %72 = vector.broadcast %cst_57 : f32 to vector<2x32xf32>
    %73 = vector.extract_strided_slice %69 {offsets = [0, 0], sizes = [2, 32], strides = [1, 1]} : vector<16x32xf32> to vector<2x32xf32>
    %cst_58 = arith.constant dense<0.000000e+00> : vector<2x32xf32>
    %74 = tpu.matmul %71, %70, %cst_58 {dimension_numbers = #tpu.dot_dimension_numbers<[1], [0], [0], [1], [0, 0, 1, 1], [], []>} : vector<2x32xf32>, vector<32x32xf32>, vector<2x32xf32> -> vector<2x32xf32>
    %75 = arith.addf %73, %74 : vector<2x32xf32>
    %76 = math.tanh %75 : vector<2x32xf32>
    %77 = arith.addf %72, %76 : vector<2x32xf32>
    %78 = vector.extract_strided_slice %69 {offsets = [2, 0], sizes = [2, 32], strides = [1, 1]} : vector<16x32xf32> to vector<2x32xf32>
    %cst_59 = arith.constant dense<0.000000e+00> : vector<2x32xf32>
    %79 = tpu.matmul %76, %70, %cst_59 {dimension_numbers = #tpu.dot_dimension_numbers<[1], [0], [0], [1], [0, 0, 1, 1], [], []>} : vector<2x32xf32>, vector<32x32xf32>, vector<2x32xf32> -> vector<2x32xf32>
    %80 = arith.addf %78, %79 : vector<2x32xf32>
    %81 = math.tanh %80 : vector<2x32xf32>
    %82 = arith.addf %77, %81 : vector<2x32xf32>
    %83 = vector.extract_strided_slice %69 {offsets = [4, 0], sizes = [2, 32], strides = [1, 1]} : vector<16x32xf32> to vector<2x32xf32>
    %cst_60 = arith.constant dense<0.000000e+00> : vector<2x32xf32>
    %84 = tpu.matmul %81, %70, %cst_60 {dimension_numbers = #tpu.dot_dimension_numbers<[1], [0], [0], [1], [0, 0, 1, 1], [], []>} : vector<2x32xf32>, vector<32x32xf32>, vector<2x32xf32> -> vector<2x32xf32>
    %85 = arith.addf %83, %84 : vector<2x32xf32>
    %86 = math.tanh %85 : vector<2x32xf32>
    %87 = arith.addf %82, %86 : vector<2x32xf32>
    %88 = vector.extract_strided_slice %69 {offsets = [6, 0], sizes = [2, 32], strides = [1, 1]} : vector<16x32xf32> to vector<2x32xf32>
    %cst_61 = arith.constant dense<0.000000e+00> : vector<2x32xf32>
    %89 = tpu.matmul %86, %70, %cst_61 {dimension_numbers = #tpu.dot_dimension_numbers<[1], [0], [0], [1], [0, 0, 1, 1], [], []>} : vector<2x32xf32>, vector<32x32xf32>, vector<2x32xf32> -> vector<2x32xf32>
    %90 = arith.addf %88, %89 : vector<2x32xf32>
    %91 = math.tanh %90 : vector<2x32xf32>
    %92 = arith.addf %87, %91 : vector<2x32xf32>
    %93 = vector.extract_strided_slice %69 {offsets = [8, 0], sizes = [2, 32], strides = [1, 1]} : vector<16x32xf32> to vector<2x32xf32>
    %cst_62 = arith.constant dense<0.000000e+00> : vector<2x32xf32>
    %94 = tpu.matmul %91, %70, %cst_62 {dimension_numbers = #tpu.dot_dimension_numbers<[1], [0], [0], [1], [0, 0, 1, 1], [], []>} : vector<2x32xf32>, vector<32x32xf32>, vector<2x32xf32> -> vector<2x32xf32>
    %95 = arith.addf %93, %94 : vector<2x32xf32>
    %96 = math.tanh %95 : vector<2x32xf32>
    %97 = arith.addf %92, %96 : vector<2x32xf32>
    %98 = vector.extract_strided_slice %69 {offsets = [10, 0], sizes = [2, 32], strides = [1, 1]} : vector<16x32xf32> to vector<2x32xf32>
    %cst_63 = arith.constant dense<0.000000e+00> : vector<2x32xf32>
    %99 = tpu.matmul %96, %70, %cst_63 {dimension_numbers = #tpu.dot_dimension_numbers<[1], [0], [0], [1], [0, 0, 1, 1], [], []>} : vector<2x32xf32>, vector<32x32xf32>, vector<2x32xf32> -> vector<2x32xf32>
    %100 = arith.addf %98, %99 : vector<2x32xf32>
    %101 = math.tanh %100 : vector<2x32xf32>
    %102 = arith.addf %97, %101 : vector<2x32xf32>
    %103 = vector.extract_strided_slice %69 {offsets = [12, 0], sizes = [2, 32], strides = [1, 1]} : vector<16x32xf32> to vector<2x32xf32>
    %cst_64 = arith.constant dense<0.000000e+00> : vector<2x32xf32>
    %104 = tpu.matmul %101, %70, %cst_64 {dimension_numbers = #tpu.dot_dimension_numbers<[1], [0], [0], [1], [0, 0, 1, 1], [], []>} : vector<2x32xf32>, vector<32x32xf32>, vector<2x32xf32> -> vector<2x32xf32>
    %105 = arith.addf %103, %104 : vector<2x32xf32>
    %106 = math.tanh %105 : vector<2x32xf32>
    %107 = arith.addf %102, %106 : vector<2x32xf32>
    %108 = vector.extract_strided_slice %69 {offsets = [14, 0], sizes = [2, 32], strides = [1, 1]} : vector<16x32xf32> to vector<2x32xf32>
    %cst_65 = arith.constant dense<0.000000e+00> : vector<2x32xf32>
    %109 = tpu.matmul %106, %70, %cst_65 {dimension_numbers = #tpu.dot_dimension_numbers<[1], [0], [0], [1], [0, 0, 1, 1], [], []>} : vector<2x32xf32>, vector<32x32xf32>, vector<2x32xf32> -> vector<2x32xf32>
    %110 = arith.addf %108, %109 : vector<2x32xf32>
    %111 = math.tanh %110 : vector<2x32xf32>
    %112 = arith.addf %107, %111 : vector<2x32xf32>
    %cst_66 = arith.constant 1.250000e-01 : f32
    %113 = vector.broadcast %cst_66 : f32 to vector<2x32xf32>
    %114 = arith.mulf %112, %113 : vector<2x32xf32>
    %c0_67 = arith.constant 0 : index
    %c0_68 = arith.constant 0 : index
    %115 = vector.load %arg6[%c0_67, %c0_68] : memref<32x2xf32, #tpu.memory_space<vmem>>, vector<32x2xf32>
    %cst_69 = arith.constant dense<0.000000e+00> : vector<2x2xf32>
    %116 = tpu.matmul %114, %115, %cst_69 {dimension_numbers = #tpu.dot_dimension_numbers<[1], [0], [0], [1], [0, 0, 1, 1], [], []>} : vector<2x32xf32>, vector<32x2xf32>, vector<2x2xf32> -> vector<2x2xf32>
    %c0_70 = arith.constant 0 : index
    %c0_71 = arith.constant 0 : index
    %117 = vector.load %arg7[%c0_70, %c0_71] : memref<1x2xf32, #tpu.memory_space<vmem>>, vector<1x2xf32>
    %118 = vector.broadcast %117 : vector<1x2xf32> to vector<2x2xf32>
    %119 = arith.addf %116, %118 : vector<2x2xf32>
    %c0_72 = arith.constant 0 : index
    %c0_73 = arith.constant 0 : index
    %120 = vector.load %arg8[%c0_72, %c0_73] : memref<2x2xf32, #tpu.memory_space<vmem>>, vector<2x2xf32>
    tpu.vector_store %arg8[%c0_72, %c0_73], %119 {strides = array<i32>} : memref<2x2xf32, #tpu.memory_space<vmem>>, vector<2x2xf32>,
    return
  }
  func.func @transform_0(%arg0: i32, %arg1: memref<16xi32, #tpu.memory_space<smem>>) -> (i32, i32) {
    %c0_i32 = arith.constant 0 : i32
    %c0_i32_0 = arith.constant 0 : i32
    %c0_i32_1 = arith.constant 0 : i32
    return %c0_i32, %c0_i32_0 : i32, i32
  }
  func.func @transform_1(%arg0: i32, %arg1: memref<16xi32, #tpu.memory_space<smem>>) -> (i32, i32) {
    %c0_i32 = arith.constant 0 : i32
    %c0_i32_0 = arith.constant 0 : i32
    %c0_i32_1 = arith.constant 0 : i32
    return %c0_i32, %c0_i32_0 : i32, i32
  }
  func.func @transform_2(%arg0: i32, %arg1: memref<16xi32, #tpu.memory_space<smem>>) -> (i32, i32) {
    %c0_i32 = arith.constant 0 : i32
    %c0_i32_0 = arith.constant 0 : i32
    %c0_i32_1 = arith.constant 0 : i32
    return %c0_i32, %c0_i32_0 : i32, i32
  }
  func.func @transform_3(%arg0: i32, %arg1: memref<16xi32, #tpu.memory_space<smem>>) -> (i32, i32) {
    %c0_i32 = arith.constant 0 : i32
    %c0_i32_0 = arith.constant 0 : i32
    %c0_i32_1 = arith.constant 0 : i32
    return %c0_i32, %c0_i32_0 : i32, i32
  }
  func.func @transform_4(%arg0: i32, %arg1: memref<16xi32, #tpu.memory_space<smem>>) -> (i32, i32) {
    %c0_i32 = arith.constant 0 : i32
    %c0_i32_0 = arith.constant 0 : i32
    %c0_i32_1 = arith.constant 0 : i32
    return %c0_i32, %c0_i32_0 : i32, i32
  }
  func.func @transform_5(%arg0: i32, %arg1: memref<16xi32, #tpu.memory_space<smem>>) -> (i32, i32) {
    %c0_i32 = arith.constant 0 : i32
    %c0_i32_0 = arith.constant 0 : i32
    %c0_i32_1 = arith.constant 0 : i32
    return %c0_i32, %c0_i32_0 : i32, i32
  }
  func.func @transform_6(%arg0: i32, %arg1: memref<16xi32, #tpu.memory_space<smem>>) -> (i32, i32) {
    %c0_i32 = arith.constant 0 : i32
    %c0_i32_0 = arith.constant 0 : i32
    %c0_i32_1 = arith.constant 0 : i32
    return %c0_i32, %c0_i32_0 : i32, i32
  }
}

</mosaic_0001>

<bundles_post_ra>
// kernel: rnn_forward.1
= control target key start
LH: loop header
LB: loop body
LE: loop exit
PB: predicated region body
PF: predicated region fallthrough
CT: control target
= control target key end

     0   :  { %s1535_s0 = inlined_call_operand.vmem [shape: s32[16], index: 0, kind: input, shape index: {}]   ;;  %s1536_s1 = inlined_call_operand.vmem [shape: f32[100,32], index: 1, kind: input, shape index: {}]   ;;  %s1537_s2 = inlined_call_operand.vmem [shape: f32[32,32], index: 2, kind: input, shape index: {}]   ;;  %s1538_s3 = inlined_call_operand.vmem [shape: f32[1,32], index: 3, kind: input, shape index: {}]   ;;  %s1539_s4 = inlined_call_operand.vmem [shape: f32[32,32], index: 4, kind: input, shape index: {}]   ;;  %s1540_s5 = inlined_call_operand.vmem [shape: f32[32,2], index: 5, kind: input, shape index: {}]   ;;  %s1541_s6 = inlined_call_operand.vmem [shape: f32[1,2], index: 6, kind: input, shape index: {}]   ;;  %s1542_s7 = inlined_call_operand.hbm [shape: f32[2,2], index: 7, kind: output, shape index: {}]  }
   0x1   :  { %s12_s26 = sshll.u32 %s1535_s0, 4  ;;  %s13_s26 = int_to_ptr.vmem [resolvable:$true] %s12_s26 }
   0x2   :  { %s1222_s27 = scalar_lea.vmem %s13_s26, 16  ;;  %p1227_p1 = scmp.lt.s32.totalorder %s13_s26, %s13_s26 }
   0x3   :  { %p1223_p0 = scmp.ne.s32.totalorder %s13_s26, %s1222_s27  ;;  %p1228_p2 = scmp.lt.s32.totalorder %s1222_s27, %s1222_s27 }
   0x5   :  { %p1229_p3 = por %p1228_p2, %p1227_p1 }
   0x7   :  { %p1230_p4 = pnand %p1229_p3, %p1223_p0 }
   0x9   :  { %1233 = shalt.err (!%p1230_p4)  }
   0xa   :  { %s1260_s28 = smov [#allocation4]  }
   0xb   :  { %15 = dma.vmem_to_smem %s13_s26, 16, %s1260_s28, [#allocation3] }
   0xc   :  { %1256 = dma.done.wait [#allocation3], 16 }
   0xd   :  { %1257 = vsyncadd [#allocation3], 4294967280 }
   0xe   :  { %17 = sfence }
   0xf   :  { %v98_v0 = vld [vmem:[%s1537_s2] sm:$0xff]  ;;  %v99_v1 = vld [vmem:[%s1537_s2 + $0x8] sm:$0xff]  ;;  %s1317_s11 = sld [smem:[#allocation4]]  ;;  %v1261_v4 = vmov 0.0|0.0   ;;  %v100_v6 = vld [vmem:[%s1537_s2 + $0x10] sm:$0xff]  ;;  %s1329_s18 = sld [smem:[#allocation4 + $0x1]] }
  0x10   :  { %v191_v2 = vld [vmem:[%s1539_s4] sm:$0xff]  ;;  %v1139_v3 = vpack.c.bf16 %v99_v1, %v98_v0  ;;  %1147 = vmatprep.subr.bf16.mxu1 %v1261_v4  ;;  %v192_v5 = vld [vmem:[%s1539_s4 + $0x8] sm:$0xff]  ;;  %v101_v7 = vld [vmem:[%s1537_s2 + $0x18] sm:$0xff]  ;;  %s1333_s19 = sld [smem:[#allocation4 + $0x2]]  ;;  %s1335_s20 = sld [smem:[#allocation4 + $0x3]]  ;;  %vm34_vm0 = vcmask 253952  }
  0x11   :  { %v1331_v8 = vpack.c.bf16 %v192_v5, %v191_v2  ;;  %v1143_v9 = vpack.c.bf16 %v101_v7, %v100_v6  ;;  %v193_v10 = vld [vmem:[%s1539_s4 + $0x10] sm:$0xff]  ;;  %s1340_s23 = sld [smem:[#allocation4 + $0x4]]  ;;  %s1342_s24 = sld [smem:[#allocation4 + $0x5]]  ;;  %v194_v11 = vld [vmem:[%s1539_s4 + $0x18] sm:$0xff] }
  0x12   :  { %1140 = vmatprep.subr.bf16.mxu0 %v1139_v3  ;;  %s1348_s26 = sld [smem:[#allocation4 + $0x6]]  ;;  %s1350_s27 = sld [smem:[#allocation4 + $0x7]]  ;;  %v1352_v12 = vpack.c.bf16 %v194_v11, %v193_v10 }
  0x13   :  { %1142 = vmatpush3.bf16.msra.mxu0 %v1139_v3  ;;  %1149 = vmatpush3.bf16.msra.mxu1 %v1331_v8  ;;  %s1355_s28 = sld [smem:[#allocation4 + $0x8]]  ;;  %s1357_s29 = sld [smem:[#allocation4 + $0x9]] }
  0x14   :  { %1144 = vmatprep.subr.bf16.mxu0 %v1143_v9  ;;  %1150 = vmatprep.subr.bf16.mxu1 %v1261_v4 }
  0x15   :  { %18 = vsyncpa [#allocation6], 0  ;;  %s32_s8 = scalar_lea.vmem %s1536_s1, %s1317_s11  ;;  %s1363_s9 = sld [smem:[#allocation4 + $0xa]]  ;;  %vm1262_vm1 = vmmov 0   ;;  %v1263_v13 = vmov 0.0   ;;  %vm109_vm2 = vcmask 261120  }
  0x16   :  { %1048 = vmatprep.mubr.msk.f32.mxu1 %vm1262_vm1, %v1263_v13  ;;  %v33_v14 = vld [vmem:[%s32_s8] sm:$0x1]  ;;  %s37_s12 = scalar_lea.vmem %s1536_s1, %s1329_s18  ;;  %s1371_s13 = sld [smem:[#allocation4 + $0xb]]  ;;  %vm919_vm3 = vcmask 9216  }
  0x17   :  { %1146 = vmatpush3.bf16.msra.mxu0 %v1143_v9  ;;  %35 = vst.msk [vmem:[#allocation2] sm:$0x1] %vm34_vm0, %v33_v14  ;;  %v38_v15 = vld [vmem:[%s37_s12] sm:$0x1]  ;;  %s41_s15 = scalar_lea.vmem %s1536_s1, %s1333_s19  ;;  %s45_s21 = scalar_lea.vmem %s1536_s1, %s1335_s20  ;;  %1152 = vmatpush3.bf16.msra.mxu1 %v1352_v12 }
  0x18   :  { %39 = vst.msk [vmem:[#allocation2 + $0x1] sm:$0x1] %vm34_vm0, %v38_v15  ;;  %v42_v16 = vld [vmem:[%s41_s15] sm:$0x1]  ;;  %s49_s25 = scalar_lea.vmem %s1536_s1, %s1340_s23  ;;  %s53_s19 = scalar_lea.vmem %s1536_s1, %s1342_s24  ;;  %1153 = vmatprep.subr.bf16.mxu0 %v1261_v4  ;;  %1159 = vmatprep.subr.bf16.mxu1 %v1261_v4 }
  0x19   :  { %v46_v17 = vld [vmem:[%s45_s21] sm:$0x1]  ;;  %43 = vst.msk [vmem:[#allocation2 + $0x2] sm:$0x1] %vm34_vm0, %v42_v16  ;;  %s57_s8 = scalar_lea.vmem %s1536_s1, %s1348_s26  ;;  %s61_s10 = scalar_lea.vmem %s1536_s1, %s1350_s27 }
  0x1a   :  { %47 = vst.msk [vmem:[#allocation2 + $0x3] sm:$0x1] %vm34_vm0, %v46_v17  ;;  %v50_v18 = vld [vmem:[%s49_s25] sm:$0x1]  ;;  %s65_s11 = scalar_lea.vmem %s1536_s1, %s1355_s28  ;;  %s69_s16 = scalar_lea.vmem %s1536_s1, %s1357_s29  ;;  %1049 = vmatmul.mubr.f32.vlgmr.msra.gmra.mrb[0].mxu1 %v1263_v13 }
  0x1b   :  { %v54_v19 = vld [vmem:[%s53_s19] sm:$0x1]  ;;  %51 = vst.msk [vmem:[#allocation2 + $0x4] sm:$0x1] %vm34_vm0, %v50_v18  ;;  %s73_s17 = scalar_lea.vmem %s1536_s1, %s1363_s9  ;;  %s962_s21 = sld [smem:[#allocation4 + $0xc]]  ;;  %1161 = vmatpush3.bf16.msra.mxu1 %v1331_v8  ;;  %1070 = vmatprep.mubr.msk.f32.mxu1 %vm1262_vm1, %v1263_v13 }
  0x1c   :  { %55 = vst.msk [vmem:[#allocation2 + $0x5] sm:$0x1] %vm34_vm0, %v54_v19  ;;  %v58_v20 = vld [vmem:[%s57_s8] sm:$0x1]  ;;  %s77_s18 = scalar_lea.vmem %s1536_s1, %s1371_s13  ;;  %s963_s22 = sld [smem:[#allocation4 + $0xd]]  ;;  %1162 = vmatprep.subr.bf16.mxu1 %v1261_v4 }
  0x1d   :  { %v62_v21 = vld [vmem:[%s61_s10] sm:$0x1]  ;;  %59 = vst.msk [vmem:[#allocation2 + $0x6] sm:$0x1] %vm34_vm0, %v58_v20  ;;  %s964_s9 = sld [smem:[#allocation4 + $0xe]]  ;;  %s965_s25 = sld [smem:[#allocation4 + $0xf]] }
  0x1e   :  { %63 = vst.msk [vmem:[#allocation2 + $0x7] sm:$0x1] %vm34_vm0, %v62_v21  ;;  %v66_v22 = vld [vmem:[%s65_s11] sm:$0x1]  ;;  %v836_v20 = vld [vmem:[%s1540_s5 + $0x8] sm:$0xff]  ;;  %v837_v21 = vld [vmem:[%s1540_s5 + $0x10] sm:$0xff] }
  0x1f   :  { %v70_v23 = vld [vmem:[%s69_s16] sm:$0x1]  ;;  %67 = vst.msk [vmem:[#allocation2 + $0x8] sm:$0x1] %vm34_vm0, %v66_v22  ;;  %1164 = vmatpush3.bf16.msra.mxu1 %v1352_v12  ;;  %v838_v22 = vld [vmem:[%s1540_s5 + $0x18] sm:$0xff] }
  0x20   :  { %71 = vst.msk [vmem:[#allocation2 + $0x9] sm:$0x1] %vm34_vm0, %v70_v23  ;;  %v74_v24 = vld [vmem:[%s73_s17] sm:$0x1]  ;;  %1171 = vmatprep.subr.bf16.mxu1 %v1261_v4  ;;  %v1199_v23 = vpack.c.bf16 %v838_v22, %v837_v21 }
  0x21   :  { %75 = vst.msk [vmem:[#allocation2 + $0xa] sm:$0x1] %vm34_vm0, %v74_v24  ;;  %v78_v25 = vld [vmem:[%s77_s18] sm:$0x1]  ;;  %s81_s19 = scalar_lea.vmem %s1536_s1, %s962_s21  ;;  %s1264_s18 = smov [#allocation5]  }
  0x22   :  { %79 = vst.msk [vmem:[#allocation2 + $0xb] sm:$0x1] %vm34_vm0, %v78_v25  ;;  %v82_v27 = vld [vmem:[%s81_s19] sm:$0x1]  ;;  %s85_s30 = scalar_lea.vmem %s1536_s1, %s963_s22 }
  0x23   :  { %83 = vst.msk [vmem:[#allocation2 + $0xc] sm:$0x1] %vm34_vm0, %v82_v27  ;;  %v86_v28 = vld [vmem:[%s85_s30] sm:$0x1]  ;;  %s89_s0 = scalar_lea.vmem %s1536_s1, %s964_s9  ;;  %s93_s12 = scalar_lea.vmem %s1536_s1, %s965_s25 }
  0x24   :  { %87 = vst.msk [vmem:[#allocation2 + $0xd] sm:$0x1] %vm34_vm0, %v86_v28  ;;  %v90_v29 = vld [vmem:[%s89_s0] sm:$0x1] }
  0x25   :  { %v96_v26 = vld [vmem:[#allocation2] sm:$0xff]  ;;  %91 = vst.msk [vmem:[#allocation2 + $0xe] sm:$0x1] %vm34_vm0, %v90_v29 }
  0x26   :  { %1037 = vmatprep.mubr.msk.f32.mxu0 %vm109_vm2, %v96_v26  ;;  %v94_v30 = vld [vmem:[%s93_s12] sm:$0x1] }
  0x27   :  { %95 = vst.msk [vmem:[#allocation2 + $0xf] sm:$0x1] %vm34_vm0, %v94_v30  ;;  %v966_v34 = vld [vmem:[%s1538_s3] ss:$0 sm:$0xff] }
  0x28   :  { %v835_v19 = vld [vmem:[%s1540_s5] sm:$0xff]  ;;  %s927_s5 = sshll.u32 %s1264_s18, 4  ;;  %s928_s5 = int_to_ptr.vmem [resolvable:$true] %s927_s5 }
  0x29   :  { %s1234_s22 = scalar_lea.vmem %s928_s5, 32  ;;  %p1239_p6 = scmp.lt.s32.totalorder %s928_s5, %s928_s5 }
  0x2a   :  { %p1235_p5 = scmp.ne.s32.totalorder %s928_s5, %s1234_s22  ;;  %p1240_p7 = scmp.lt.s32.totalorder %s1234_s22, %s1234_s22 }
  0x2c   :  { %p1241_p8 = por %p1240_p7, %p1239_p6 }
  0x2e   :  { %v97_v31 = vld [vmem:[#allocation2 + $0x8] sm:$0xff]  ;;  %p1242_p9 = pnand %p1241_p8, %p1235_p5 }
  0x2f   :  { %1038 = vmatmul.mubr.msk.f32.vlgmr.msra.gmra.mrb[0].mxu0 %vm109_vm2, %v97_v31  ;;  %v976_v31 = vld [vmem:[%s1541_s6] ss:$0 sm:$0xff] }
  0x30   :  { %1155 = vmatpush3.bf16.msra.mxu0 %v1331_v8  ;;  %1059 = vmatprep.mubr.msk.f32.mxu0 %vm1262_vm1, %v1263_v13 }
  0x31   :  { %1156 = vmatprep.subr.bf16.mxu0 %v1261_v4 }
  0x34   :  { %1158 = vmatpush3.bf16.msra.mxu0 %v1352_v12 }
  0x35   :  { %1165 = vmatprep.subr.bf16.mxu0 %v1261_v4 }
  0xed   :  { %v264_v32 = vpop.f32.mrb[0].mxu1 }
  0xee   :  { %v1050_v33 = vpop.f32.mrb[1].mxu1 }
 0x102   :  { %v1039_v35 = vpop.f32.mrb[0].mxu0 }
 0x103   :  { %v1462_v36 = vadd.f32 %v1039_v35, %v966_v34  ;;  %v182_v37 = vpop.f32.mrb[1].mxu0 }
 0x104   :  { %v183_v38 = vadd.f32 %v966_v34, %v182_v37 }
 0x106   :  { %v268_v39 = vadd.f32 %v264_v32, %v183_v38 }
 0x108   :  { %1206 = vtanh.f32 %v268_v39 }
 0x112   :  { %v1207_v40 = vpop.eup %1206 }
 0x113   :  { %1060 = vmatmul.mubr.msk.f32.vlgmr.msra.gmra.mrb[2].mxu0 %vm109_vm2, %v1207_v40 }
 0x114   :  { %1167 = vmatpush3.bf16.msra.mxu0 %v1331_v8  ;;  %1081 = vmatprep.mubr.msk.f32.mxu0 %vm1262_vm1, %v1263_v13 }
 0x115   :  { %1168 = vmatprep.subr.bf16.mxu0 %v1261_v4 }
 0x118   :  { %1170 = vmatpush3.bf16.msra.mxu0 %v1352_v12 }
 0x119   :  { %1177 = vmatprep.subr.bf16.mxu0 %v1261_v4 }
 0x1e6   :  { %v340_v41 = vpop.f32.mrb[2].mxu0 }
 0x1e7   :  { %v345_v42 = vrot.slane %v340_v41, 6  ;;  %v1061_v43 = vpop.f32.mrb[3].mxu0 }
 0x1e9   :  { %v347_v44 = vadd.f32 %v345_v42, %v183_v38 }
 0x1eb   :  { %1208 = vtanh.f32 %v347_v44 }
 0x1f5   :  { %v1209_v45 = vpop.eup %1208 }
 0x1f6   :  { %v350_v46 = vrot.slane %v1209_v45, 2 }
 0x1f8   :  { %1071 = vmatmul.mubr.msk.f32.vlgmr.msra.gmra.mrb[2].mxu1 %vm109_vm2, %v350_v46  ;;  %v352_v52 = vadd.f32 %v1207_v40, %v350_v46 }
 0x1f9   :  { %1173 = vmatpush3.bf16.msra.mxu1 %v1331_v8  ;;  %1092 = vmatprep.mubr.msk.f32.mxu1 %vm1262_vm1, %v1263_v13 }
 0x1fa   :  { %1174 = vmatprep.subr.bf16.mxu1 %v1261_v4 }
 0x1fd   :  { %1176 = vmatpush3.bf16.msra.mxu1 %v1352_v12 }
 0x1fe   :  { %1183 = vmatprep.subr.bf16.mxu1 %v1261_v4 }
 0x2cb   :  { %v421_v47 = vpop.f32.mrb[2].mxu1 }
 0x2cc   :  { %v426_v48 = vrot.slane %v421_v47, 4  ;;  %v1072_v49 = vpop.f32.mrb[3].mxu1 }
 0x2ce   :  { %v428_v50 = vadd.f32 %v426_v48, %v183_v38 }
 0x2d0   :  { %1210 = vtanh.f32 %v428_v50 }
 0x2da   :  { %v1211_v51 = vpop.eup %1210 }
 0x2db   :  { %v431_v53 = vrot.slane %v1211_v51, 4 }
 0x2dd   :  { %v433_v54 = vadd.f32 %v431_v53, %v352_v52  ;;  %1082 = vmatmul.mubr.msk.f32.vlgmr.msra.gmra.mrb[4].mxu0 %vm109_vm2, %v431_v53 }
 0x2de   :  { %1179 = vmatpush3.bf16.msra.mxu0 %v1331_v8  ;;  %1103 = vmatprep.mubr.msk.f32.mxu0 %vm1262_vm1, %v1263_v13 }
 0x2df   :  { %1180 = vmatprep.subr.bf16.mxu0 %v1261_v4 }
 0x2e2   :  { %1182 = vmatpush3.bf16.msra.mxu0 %v1352_v12 }
 0x2e3   :  { %1189 = vmatprep.subr.bf16.mxu0 %v1261_v4 }
 0x3b0   :  { %v502_v55 = vpop.f32.mrb[4].mxu0 }
 0x3b1   :  { %v507_v56 = vrot.slane %v502_v55, 2  ;;  %v1083_v57 = vpop.f32.mrb[5].mxu0 }
 0x3b3   :  { %v509_v58 = vadd.f32 %v507_v56, %v183_v38 }
 0x3b5   :  { %1212 = vtanh.f32 %v509_v58 }
 0x3bf   :  { %v1213_v59 = vpop.eup %1212 }
 0x3c0   :  { %v512_v60 = vrot.slane %v1213_v59, 6 }
 0x3c2   :  { %v514_v61 = vadd.f32 %v512_v60, %v433_v54  ;;  %1093 = vmatmul.mubr.msk.f32.vlgmr.msra.gmra.mrb[4].mxu1 %vm109_vm2, %v512_v60 }
 0x3c3   :  { %1185 = vmatpush3.bf16.msra.mxu1 %v1331_v8  ;;  %1114 = vmatprep.mubr.msk.f32.mxu1 %vm1262_vm1, %v1263_v13 }
 0x3c4   :  { %1186 = vmatprep.subr.bf16.mxu1 %v1261_v4 }
 0x3c7   :  { %1188 = vmatpush3.bf16.msra.mxu1 %v1352_v12 }
 0x3c8   :  { %1195 = vmatprep.subr.bf16.mxu1 %v1261_v4 }
 0x495   :  { %v583_v62 = vpop.f32.mrb[4].mxu1 }
 0x496   :  { %v587_v63 = vadd.f32 %v583_v62, %v1462_v36  ;;  %v1094_v0 = vpop.f32.mrb[5].mxu1 }
 0x498   :  { %1214 = vtanh.f32 %v587_v63 }
 0x4a2   :  { %v1215_v1 = vpop.eup %1214 }
 0x4a3   :  { %1104 = vmatmul.mubr.msk.f32.vlgmr.msra.gmra.mrb[6].mxu0 %vm109_vm2, %v1215_v1  ;;  %v589_v2 = vadd.f32 %v1215_v1, %v514_v61 }
 0x4a4   :  { %1191 = vmatpush3.bf16.msra.mxu0 %v1331_v8  ;;  %1125 = vmatprep.mubr.msk.f32.mxu0 %vm1262_vm1, %v1263_v13 }
 0x4a5   :  { %1192 = vmatprep.subr.bf16.mxu0 %v1261_v4 }
 0x4a8   :  { %1194 = vmatpush3.bf16.msra.mxu0 %v1352_v12 }
 0x576   :  { %v659_v3 = vpop.f32.mrb[6].mxu0 }
 0x577   :  { %v664_v5 = vrot.slane %v659_v3, 6  ;;  %v1105_v6 = vpop.f32.mrb[7].mxu0 }
 0x579   :  { %v666_v7 = vadd.f32 %v664_v5, %v1462_v36 }
 0x57b   :  { %1216 = vtanh.f32 %v666_v7 }
 0x585   :  { %v1217_v9 = vpop.eup %1216 }
 0x586   :  { %v669_v10 = vrot.slane %v1217_v9, 2 }
 0x588   :  { %v671_v11 = vadd.f32 %v669_v10, %v589_v2  ;;  %1115 = vmatmul.mubr.msk.f32.vlgmr.msra.gmra.mrb[6].mxu1 %vm109_vm2, %v669_v10 }
 0x589   :  { %1136 = vmatprep.mubr.msk.f32.mxu1 %vm1262_vm1, %v1263_v13  ;;  %v1196_v13 = vpack.c.bf16 %v836_v20, %v835_v19 }
 0x58b   :  { %1197 = vmatpush3.bf16.msra.mxu1 %v1196_v13 }
 0x58c   :  { %1198 = vmatprep.subr.bf16.mxu1 %v1261_v4 }
 0x58f   :  { %1200 = vmatpush3.bf16.msra.mxu1 %v1199_v23 }
 0x65b   :  { %v740_v8 = vpop.f32.mrb[6].mxu1 }
 0x65c   :  { %v745_v14 = vrot.slane %v740_v8, 4  ;;  %v1116_v15 = vpop.f32.mrb[7].mxu1 }
 0x65e   :  { %v747_v16 = vadd.f32 %v745_v14, %v1462_v36 }
 0x660   :  { %1218 = vtanh.f32 %v747_v16 }
 0x66a   :  { %v1219_v12 = vpop.eup %1218 }
 0x66b   :  { %v750_v17 = vrot.slane %v1219_v12, 4 }
 0x66d   :  { %v752_v18 = vadd.f32 %v750_v17, %v671_v11  ;;  %1126 = vmatmul.mubr.msk.f32.vlgmr.msra.gmra.mrb[8].mxu0 %vm109_vm2, %v750_v17 }
 0x740   :  { %v821_v24 = vpop.f32.mrb[8].mxu0 }
 0x741   :  { %v826_v25 = vrot.slane %v821_v24, 2  ;;  %v1127_v26 = vpop.f32.mrb[9].mxu0 }
 0x743   :  { %v828_v27 = vadd.f32 %v826_v25, %v1462_v36 }
 0x745   :  { %1220 = vtanh.f32 %v828_v27 }
 0x74f   :  { %v1221_v28 = vpop.eup %1220 }
 0x750   :  { %v831_v29 = vrot.slane %v1221_v28, 6 }
 0x752   :  { %v833_v30 = vadd.f32 %v831_v29, %v752_v18 }
 0x754   :  { %v834_v4 = vmul.f32 0.125, %v833_v30 }
 0x756   :  { %1137 = vmatmul.mubr.msk.f32.vlgmr.msra.gmra.mrb[8].mxu1 %vm109_vm2, %v834_v4 }
 0x829   :  { %v915_v32 = vpop.f32.mrb[8].mxu1 }
 0x82a   :  { %v916_v33 = vadd.f32 %v976_v31, %v915_v32  ;;  %v1138_v34 = vpop.f32.mrb[9].mxu1 }
 0x82c   :  { %920 = vst.msk [vmem:[#allocation5] sm:$0x3] %vm919_vm3, %v916_v33 }
 0x82d   :  { %1245 = shalt.err (!%p1242_p9)
}
 0x82e   :  { %s1246_s2 = scalar_lea.hbm %s1542_s7, 32 }
 0x82f   :  { %p1247_p10 = scmp.ne.s32.totalorder %s1542_s7, %s1246_s2  ;;  %p1250_p11 = scmp.lt.u32.totalorder %s1246_s2, %s1542_s7 }
 0x831   :  { %p1252_p12 = pnand %p1250_p11, %p1247_p10 }
 0x833   :  { %1255 = shalt.err (!%p1252_p12)
}
 0x834   :  { %930 = dma.vmem_to_hbm [thread:$0]  %s928_s5, 32, %s1542_s7, [#allocation6]  }
 0x835   :  { %1258 = dma.done.wait [#allocation6], 32  }
 0x836   :  { %1259 = vsyncadd [#allocation6], 4294967264 }
 0x837   :  { %934 = vsyncpa [#allocation6], 1 }

</bundles_post_ra>
